<compile_context>
chip_gen: v6e
topology: v6e:2x2x1
jax: 0.10.0
libtpu: 0.0.40
codegen_flags: <defaults>
</compile_context>

<pallas_src>
import functools

import jax
import jax.numpy as jnp
from jax.experimental import pallas as pl
from jax.experimental.pallas import tpu as pltpu

LANE = 128
SUBLANE = 8


def _round_up(x, m):
    return (x + m - 1) // m * m


# --------------------------------------------------------------------------
# Kernel: one batch tile of the full 3-layer MLP.  Weights/biases are small
# and VMEM-resident across the whole grid (constant index_map).
# --------------------------------------------------------------------------
def actor_kernel(x_ref, w1_ref, b1_ref, w2_ref, b2_ref, w3_ref, b3_ref, o_ref):
    cdt = w1_ref.dtype  # MXU operand dtype (f32 or bf16); accumulation is f32.
    x = x_ref[...].astype(cdt)

    h1 = jnp.dot(x, w1_ref[...], preferred_element_type=jnp.float32) + b1_ref[...]
    h1 = jnp.maximum(h1, 0.0)

    h2 = jnp.dot(h1.astype(cdt), w2_ref[...], preferred_element_type=jnp.float32) + b2_ref[...]
    h2 = jnp.maximum(h2, 0.0)

    h3 = jnp.dot(h2.astype(cdt), w3_ref[...], preferred_element_type=jnp.float32) + b3_ref[...]
    o_ref[...] = jnp.tanh(h3).astype(o_ref.dtype)


# --------------------------------------------------------------------------
# One-time parameter preparation (hoisted out of the forward path):
#   PyTorch (out, in) weights -> (in, out).  Only the hidden feature dim is
#   zero-padded to a multiple of 128 (exact: padded units are relu(0)=0).
#   Input and output dims are left at their natural sizes.
#   Biases stay f32 so elementwise work is f32 on every chip generation.
# --------------------------------------------------------------------------
def prepare_actor_params(params, compute_dtype=jnp.float32):
    hid, in_size = params["w1"].shape
    out_size = params["w3"].shape[0]
    hid_p = _round_up(hid, LANE)

    w1 = jnp.zeros((in_size, hid_p), compute_dtype).at[:, :hid].set(
        params["w1"].T.astype(compute_dtype))
    b1 = jnp.zeros((1, hid_p), jnp.float32).at[0, :hid].set(params["b1"])

    w2 = jnp.zeros((hid_p, hid_p), compute_dtype).at[:hid, :hid].set(
        params["w2"].T.astype(compute_dtype))
    b2 = jnp.zeros((1, hid_p), jnp.float32).at[0, :hid].set(params["b2"])

    w3 = jnp.zeros((hid_p, out_size), compute_dtype).at[:hid, :].set(
        params["w3"].T.astype(compute_dtype))
    b3 = params["b3"].reshape(1, out_size).astype(jnp.float32)

    return {
        "w1": w1, "b1": b1, "w2": w2, "b2": b2, "w3": w3, "b3": b3,
        "in_size": in_size, "out_size": out_size,
    }


# --------------------------------------------------------------------------
# Forward wrapper: tiles over the batch; pads batch rows only (to a multiple
# of 8, sized so the tile (nearly) divides the padded batch), no feature pad.
# --------------------------------------------------------------------------
def actor_forward(state, prepped, *, tile_b=512):
    B, in_size = state.shape
    assert in_size == prepped["in_size"]
    out_size = prepped["out_size"]
    hid_p = prepped["w2"].shape[0]

    # Batch tiling: pad rows only to a multiple of 8; pick a tile that nearly
    # divides the padded batch (avoids up-to-tb-1 rows of dead DMA/compute).
    B8 = _round_up(B, SUBLANE)
    n = max(1, pl.cdiv(B8, tile_b))
    if n == 1 and B8 >= 2 * 64:
        # Mid-size batch in a single tile: split so both v7x TCs get work.
        n = 2
    tb = _round_up(pl.cdiv(B8, n), SUBLANE)
    B_pad = n * tb

    if B_pad != B:
        x = jnp.zeros((B_pad, in_size), state.dtype).at[:B].set(state)
    else:
        x = state

    const = lambda arr: pl.BlockSpec(arr.shape, lambda i: (0, 0))  # VMEM-resident

    out = pl.pallas_call(
        actor_kernel,
        out_shape=jax.ShapeDtypeStruct((B_pad, out_size), state.dtype),
        grid=(n,),
        in_specs=[
            pl.BlockSpec((tb, in_size), lambda i: (i, 0)),   # state tile (pipelined)
            const(prepped["w1"]), const(prepped["b1"]),      # layer 1
            const(prepped["w2"]), const(prepped["b2"]),      # layer 2
            const(prepped["w3"]), const(prepped["b3"]),      # layer 3
        ],
        out_specs=pl.BlockSpec((tb, out_size), lambda i: (i, 0)),
        compiler_params=pltpu.CompilerParams(
            dimension_semantics=("parallel",),
        ),
    )(
        x,
        prepped["w1"], prepped["b1"],
        prepped["w2"], prepped["b2"],
        prepped["w3"], prepped["b3"],
    )

    return out[:B] if B_pad != B else out


# --------------------------------------------------------------------------
# Init + pure-JAX reference (PyTorch layout / semantics).
# --------------------------------------------------------------------------
def init_actor_params(key, input_size, hidden_size, output_size):
    """nn.Linear default init: U(-1/sqrt(fan_in), 1/sqrt(fan_in)), (out, in) weights."""
    ks = jax.random.split(key, 6)

    def lin(kw, kb, fan_in, fan_out):
        bound = 1.0 / jnp.sqrt(jnp.float32(fan_in))
        w = jax.random.uniform(kw, (fan_out, fan_in), jnp.float32, -bound, bound)
        b = jax.random.uniform(kb, (fan_out,), jnp.float32, -bound, bound)
        return w, b

    w1, b1 = lin(ks[0], ks[1], input_size, hidden_size)
    w2, b2 = lin(ks[2], ks[3], hidden_size, hidden_size)
    w3, b3 = lin(ks[4], ks[5], hidden_size, output_size)
    return {"w1": w1, "b1": b1, "w2": w2, "b2": b2, "w3": w3, "b3": b3}


def actor_reference(state, p):
    x = jnp.maximum(state @ p["w1"].T + p["b1"], 0.0)
    x = jnp.maximum(x @ p["w2"].T + p["b2"], 0.0)
    return jnp.tanh(x @ p["w3"].T + p["b3"])


if __name__ == "__main__":
    key = jax.random.PRNGKey(0)
    k_param, k_state, k_state2 = jax.random.split(key, 3)

    batch, input_size, hidden_size, output_size = 8, 16, 32, 8
    params = init_actor_params(k_param, input_size, hidden_size, output_size)
    state = jax.random.normal(k_state, (batch, input_size), jnp.float32)
    ref = actor_reference(state, params)

    # f32 operand path: bit-tight parity with the reference.
    prepped_f32 = prepare_actor_params(params, compute_dtype=jnp.float32)
    fwd_f32 = jax.jit(functools.partial(actor_forward, prepped=prepped_f32))
    out_f32 = jax.block_until_ready(fwd_f32(state))
    assert out_f32.shape == (batch, output_size)
    assert jnp.allclose(out_f32, ref, atol=1e-5, rtol=1e-5), "f32 path mismatch"

    # bf16 operand path: native MXU rate on v6e/v7x, f32 accumulate/elementwise.
    prepped_bf16 = prepare_actor_params(params, compute_dtype=jnp.bfloat16)
    fwd_bf16 = jax.jit(functools.partial(actor_forward, prepped=prepped_bf16))
    out_bf16 = jax.block_until_ready(fwd_bf16(state))
    assert out_bf16.shape == (batch, output_size)
    assert jnp.allclose(out_bf16, ref, atol=3e-2, rtol=3e-2), "bf16 path mismatch"

    # Multi-tile grid + row-pad path (B not a multiple of the tile).
    batch2 = 200
    state2 = jax.random.normal(k_state2, (batch2, input_size), jnp.float32)
    out2 = jax.block_until_ready(actor_forward(state2, prepped_f32, tile_b=64))
    assert out2.shape == (batch2, output_size)
    assert jnp.allclose(out2, actor_reference(state2, params), atol=1e-5, rtol=1e-5), \
        "multi-tile path mismatch"

    print("KERNEL_OK")
</pallas_src>

<mosaic_0001>
module attributes {stable_mosaic.version = 11 : i64} {
  func.func @actor_kernel(%arg0: i32, %arg1: memref<8x16xf32, #tpu.memory_space<vmem>>, %arg2: memref<16x128xf32, #tpu.memory_space<vmem>>, %arg3: memref<1x128xf32, #tpu.memory_space<vmem>>, %arg4: memref<128x128xf32, #tpu.memory_space<vmem>>, %arg5: memref<1x128xf32, #tpu.memory_space<vmem>>, %arg6: memref<128x8xf32, #tpu.memory_space<vmem>>, %arg7: memref<1x8xf32, #tpu.memory_space<vmem>>, %arg8: memref<8x8xf32, #tpu.memory_space<vmem>>) attributes {dimension_semantics = [#tpu.dimension_semantics<parallel>], iteration_bounds = array<i64: 1>, scalar_prefetch = 0 : i64, scratch_operands = 0 : i64, tpu.core_type = #tpu.core_type<tc>, window_params = [{transform_indices = @transform_0, window_bounds = array<i64: 8, 16>}, {pipeline_mode = #tpu.pipeline_mode<synchronous>, transform_indices = @transform_1, window_bounds = array<i64: 16, 128>}, {pipeline_mode = #tpu.pipeline_mode<synchronous>, transform_indices = @transform_2, window_bounds = array<i64: 1, 128>}, {pipeline_mode = #tpu.pipeline_mode<synchronous>, transform_indices = @transform_3, window_bounds = array<i64: 128, 128>}, {pipeline_mode = #tpu.pipeline_mode<synchronous>, transform_indices = @transform_4, window_bounds = array<i64: 1, 128>}, {pipeline_mode = #tpu.pipeline_mode<synchronous>, transform_indices = @transform_5, window_bounds = array<i64: 128, 8>}, {pipeline_mode = #tpu.pipeline_mode<synchronous>, transform_indices = @transform_6, window_bounds = array<i64: 1, 8>}, {transform_indices = @transform_7, window_bounds = array<i64: 8, 8>}]} {
    %c0 = arith.constant 0 : index
    %c0_0 = arith.constant 0 : index
    %0 = vector.load %arg1[%c0, %c0_0] : memref<8x16xf32, #tpu.memory_space<vmem>>, vector<8x16xf32>
    %c0_1 = arith.constant 0 : index
    %c0_2 = arith.constant 0 : index
    %1 = vector.load %arg2[%c0_1, %c0_2] : memref<16x128xf32, #tpu.memory_space<vmem>>, vector<16x128xf32>
    %cst = arith.constant dense<0.000000e+00> : vector<8x128xf32>
    %2 = tpu.matmul %0, %1, %cst {dimension_numbers = #tpu.dot_dimension_numbers<[1], [0], [0], [1], [0, 0, 1, 1], [], []>} : vector<8x16xf32>, vector<16x128xf32>, vector<8x128xf32> -> vector<8x128xf32>
    %c0_3 = arith.constant 0 : index
    %c0_4 = arith.constant 0 : index
    %3 = vector.load %arg3[%c0_3, %c0_4] : memref<1x128xf32, #tpu.memory_space<vmem>>, vector<1x128xf32>
    %4 = vector.broadcast %3 : vector<1x128xf32> to vector<8x128xf32>
    %5 = arith.addf %2, %4 : vector<8x128xf32>
    %cst_5 = arith.constant 0.000000e+00 : f32
    %6 = vector.broadcast %cst_5 : f32 to vector<8x128xf32>
    %7 = arith.maximumf %5, %6 : vector<8x128xf32>
    %c0_6 = arith.constant 0 : index
    %c0_7 = arith.constant 0 : index
    %8 = vector.load %arg4[%c0_6, %c0_7] : memref<128x128xf32, #tpu.memory_space<vmem>>, vector<128x128xf32>
    %cst_8 = arith.constant dense<0.000000e+00> : vector<8x128xf32>
    %9 = tpu.matmul %7, %8, %cst_8 {dimension_numbers = #tpu.dot_dimension_numbers<[1], [0], [0], [1], [0, 0, 1, 1], [], []>} : vector<8x128xf32>, vector<128x128xf32>, vector<8x128xf32> -> vector<8x128xf32>
    %c0_9 = arith.constant 0 : index
    %c0_10 = arith.constant 0 : index
    %10 = vector.load %arg5[%c0_9, %c0_10] : memref<1x128xf32, #tpu.memory_space<vmem>>, vector<1x128xf32>
    %11 = vector.broadcast %10 : vector<1x128xf32> to vector<8x128xf32>
    %12 = arith.addf %9, %11 : vector<8x128xf32>
    %cst_11 = arith.constant 0.000000e+00 : f32
    %13 = vector.broadcast %cst_11 : f32 to vector<8x128xf32>
    %14 = arith.maximumf %12, %13 : vector<8x128xf32>
    %c0_12 = arith.constant 0 : index
    %c0_13 = arith.constant 0 : index
    %15 = vector.load %arg6[%c0_12, %c0_13] : memref<128x8xf32, #tpu.memory_space<vmem>>, vector<128x8xf32>
    %cst_14 = arith.constant dense<0.000000e+00> : vector<8x8xf32>
    %16 = tpu.matmul %14, %15, %cst_14 {dimension_numbers = #tpu.dot_dimension_numbers<[1], [0], [0], [1], [0, 0, 1, 1], [], []>} : vector<8x128xf32>, vector<128x8xf32>, vector<8x8xf32> -> vector<8x8xf32>
    %c0_15 = arith.constant 0 : index
    %c0_16 = arith.constant 0 : index
    %17 = vector.load %arg7[%c0_15, %c0_16] : memref<1x8xf32, #tpu.memory_space<vmem>>, vector<1x8xf32>
    %18 = vector.broadcast %17 : vector<1x8xf32> to vector<8x8xf32>
    %19 = arith.addf %16, %18 : vector<8x8xf32>
    %20 = math.tanh %19 : vector<8x8xf32>
    %c0_17 = arith.constant 0 : index
    %c0_18 = arith.constant 0 : index
    %21 = vector.load %arg8[%c0_17, %c0_18] : memref<8x8xf32, #tpu.memory_space<vmem>>, vector<8x8xf32>
    tpu.vector_store %arg8[%c0_17, %c0_18], %20 {strides = array<i32>} : memref<8x8xf32, #tpu.memory_space<vmem>>, vector<8x8xf32>,
    return
  }
  func.func @transform_0(%arg0: i32) -> (i32, i32) {
    %c0_i32 = arith.constant 0 : i32
    %c0_i32_0 = arith.constant 0 : i32
    return %arg0, %c0_i32 : i32, i32
  }
  func.func @transform_1(%arg0: i32) -> (i32, i32) {
    %c0_i32 = arith.constant 0 : i32
    %c0_i32_0 = arith.constant 0 : i32
    %c0_i32_1 = arith.constant 0 : i32
    return %c0_i32, %c0_i32_0 : i32, i32
  }
  func.func @transform_2(%arg0: i32) -> (i32, i32) {
    %c0_i32 = arith.constant 0 : i32
    %c0_i32_0 = arith.constant 0 : i32
    %c0_i32_1 = arith.constant 0 : i32
    return %c0_i32, %c0_i32_0 : i32, i32
  }
  func.func @transform_3(%arg0: i32) -> (i32, i32) {
    %c0_i32 = arith.constant 0 : i32
    %c0_i32_0 = arith.constant 0 : i32
    %c0_i32_1 = arith.constant 0 : i32
    return %c0_i32, %c0_i32_0 : i32, i32
  }
  func.func @transform_4(%arg0: i32) -> (i32, i32) {
    %c0_i32 = arith.constant 0 : i32
    %c0_i32_0 = arith.constant 0 : i32
    %c0_i32_1 = arith.constant 0 : i32
    return %c0_i32, %c0_i32_0 : i32, i32
  }
  func.func @transform_5(%arg0: i32) -> (i32, i32) {
    %c0_i32 = arith.constant 0 : i32
    %c0_i32_0 = arith.constant 0 : i32
    %c0_i32_1 = arith.constant 0 : i32
    return %c0_i32, %c0_i32_0 : i32, i32
  }
  func.func @transform_6(%arg0: i32) -> (i32, i32) {
    %c0_i32 = arith.constant 0 : i32
    %c0_i32_0 = arith.constant 0 : i32
    %c0_i32_1 = arith.constant 0 : i32
    return %c0_i32, %c0_i32_0 : i32, i32
  }
  func.func @transform_7(%arg0: i32) -> (i32, i32) {
    %c0_i32 = arith.constant 0 : i32
    %c0_i32_0 = arith.constant 0 : i32
    return %arg0, %c0_i32 : i32, i32
  }
}

</mosaic_0001>

<bundles_post_ra>
// kernel: actor_forward.1
= control target key start
LH: loop header
LB: loop body
LE: loop exit
PB: predicated region body
PF: predicated region fallthrough
CT: control target
= control target key end

     0   :  { %12 = vsyncpa [#allocation3], 0  ;;  %s731_s0 = inlined_call_operand.hbm [shape: f32[8,16], index: 0, kind: input, shape index: {}]   ;;  %s732_s1 = inlined_call_operand.hbm [shape: f32[16,128], index: 1, kind: input, shape index: {}]   ;;  %s733_s2 = inlined_call_operand.vmem [shape: f32[1,128], index: 2, kind: input, shape index: {}]   ;;  %s734_s3 = inlined_call_operand.hbm [shape: f32[128,128], index: 3, kind: input, shape index: {}]   ;;  %s735_s4 = inlined_call_operand.vmem [shape: f32[1,128], index: 4, kind: input, shape index: {}]   ;;  %s736_s5 = inlined_call_operand.hbm [shape: f32[128,8], index: 5, kind: input, shape index: {}]   ;;  %s737_s6 = inlined_call_operand.vmem [shape: f32[1,8], index: 6, kind: input, shape index: {}]   ;;  %s738_s7 = inlined_call_operand.hbm [shape: f32[8,8], index: 7, kind: output, shape index: {}]  }
   0x1   :  { %13 = vsyncpa [#allocation6], 0 }
   0x2   :  { %14 = vsyncpa [#allocation9], 0 }
   0x3   :  { %15 = vsyncpa [#allocation4], 0  ;;  %s609_s24 = smov [#allocation5]  }
   0x4   :  { %s31_s25 = sshll.u32 %s609_s24, 4  ;;  %s32_s25 = int_to_ptr.vmem [resolvable:$true] %s31_s25 }
   0x5   :  { %s509_s26 = scalar_lea.vmem %s32_s25, 256  ;;  %p514_p1 = scmp.lt.s32.totalorder %s32_s25, %s32_s25 }
   0x6   :  { %p510_p0 = scmp.ne.s32.totalorder %s32_s25, %s509_s26  ;;  %p515_p2 = scmp.lt.s32.totalorder %s509_s26, %s509_s26 }
   0x8   :  { %p516_p3 = por %p515_p2, %p514_p1 }
   0xa   :  { %p517_p4 = pnand %p516_p3, %p510_p0 }
   0xc   :  { %520 = shalt.err (!%p517_p4)
}
   0xd   :  { %s610_s27 = smov 128   ;;  %s611_s28 = smov 8  }
   0xe   :  { %37 = dma.hbm_to_vmem [thread:$0]  %s732_s1, 256, %s32_s25, [#allocation6], %s610_s27, %s610_s27, %s611_s28  }
   0xf   :  { %s612_s8 = smov [#allocation2]   ;;  %s613_s10 = smov [#allocation7]  }
  0x10   :  { %s22_s9 = sshll.u32 %s612_s8, 4  ;;  %s45_s11 = sshll.u32 %s613_s10, 4  ;;  %s23_s9 = int_to_ptr.vmem [resolvable:$true] %s22_s9  ;;  %s46_s11 = int_to_ptr.vmem [resolvable:$true] %s45_s11 }
  0x11   :  { %s529_s12 = scalar_lea.vmem %s23_s9, 128  ;;  %p534_p6 = scmp.lt.s32.totalorder %s23_s9, %s23_s9 }
  0x12   :  { %p530_p5 = scmp.ne.s32.totalorder %s23_s9, %s529_s12  ;;  %p535_p7 = scmp.lt.s32.totalorder %s529_s12, %s529_s12 }
  0x14   :  { %p536_p8 = por %p535_p7, %p534_p6 }
  0x16   :  { %p537_p9 = pnand %p536_p8, %p530_p5 }
  0x18   :  { %540 = shalt.err (!%p537_p9)
}
  0x19   :  { %25 = dma.hbm_to_vmem [thread:$0]  %s731_s0, 128, %s23_s9, [#allocation3]  }
  0x1a   :  { %s549_s15 = scalar_lea.vmem %s46_s11, 2048  ;;  %p554_p11 = scmp.lt.s32.totalorder %s46_s11, %s46_s11 }
  0x1b   :  { %p550_p10 = scmp.ne.s32.totalorder %s46_s11, %s549_s15  ;;  %p555_p12 = scmp.lt.s32.totalorder %s549_s15, %s549_s15 }
  0x1d   :  { %p556_p13 = por %p555_p12, %p554_p11 }
  0x1f   :  { %p557_p0 = pnand %p556_p13, %p550_p10 }
  0x21   :  { %560 = shalt.err (!%p557_p0)
}
  0x22   :  { %51 = dma.hbm_to_vmem [thread:$0]  %s734_s3, 2048, %s46_s11, [#allocation6], %s610_s27, %s610_s27, %s611_s28  }
  0x23   :  { %s614_s17 = smov [#allocation8]  }
  0x24   :  { %s59_s18 = sshll.u32 %s614_s17, 4  ;;  %s60_s18 = int_to_ptr.vmem [resolvable:$true] %s59_s18 }
  0x25   :  { %s569_s19 = scalar_lea.vmem %s60_s18, 2048  ;;  %p574_p2 = scmp.lt.s32.totalorder %s60_s18, %s60_s18 }
  0x26   :  { %p570_p1 = scmp.ne.s32.totalorder %s60_s18, %s569_s19  ;;  %p575_p3 = scmp.lt.s32.totalorder %s569_s19, %s569_s19 }
  0x28   :  { %p576_p4 = por %p575_p3, %p574_p2 }
  0x2a   :  { %p577_p5 = pnand %p576_p4, %p570_p1 }
  0x2c   :  { %580 = shalt.err (!%p577_p5)
}
  0x2d   :  { %65 = dma.hbm_to_vmem [thread:$0]  %s736_s5, 2048, %s60_s18, [#allocation9], %s610_s27, %s610_s27, %s611_s28  }
  0x2e   :  { %601 = dma.done.wait [#allocation3], 128  }
  0x2f   :  { %602 = vsyncadd [#allocation3], 4294967168 }
  0x30   :  { %603 = dma.done.wait [#allocation6], 2304  }
  0x31   :  { %604 = vsyncadd [#allocation6], 4294964992 }
  0x32   :  { %605 = dma.done.wait [#allocation9], 2048  }
  0x33   :  { %606 = vsyncadd [#allocation9], 4294965248  ;;  %v615_v0 = vmov 0.0   ;;  %vm616_vm0 = vmmov 0   ;;  %v82_v1 = vld [vmem:[#allocation5 + $0x8] sm:$0xff]  ;;  %v81_v2 = vld [vmem:[#allocation5] sm:$0xff] }
  0x34   :  { %413 = vmatprep.subr.mxu0 %v615_v0  ;;  %417 = vmatprep.mubr.msk.f32.mxu0 %vm616_vm0, %v615_v0  ;;  %v80_v3 = vld [vmem:[#allocation2] sm:$0xff]  ;;  %vm90_vm1 = vcmask 130048   ;;  %v180_v4 = vld [vmem:[#allocation7 + $0x78] sm:$0xff]  ;;  %v179_v5 = vld [vmem:[#allocation7 + $0x70] sm:$0xff]  ;;  %s617_s24 = smov [#allocation10]   ;;  %vm353_vm2 = vcmask 64512  }
  0x35   :  { %420 = vmatprep.subr.mxu1 %v615_v0  ;;  %452 = vmatprep.mubr.msk.f32.mxu1 %vm616_vm0, %v615_v0  ;;  %v178_v6 = vld [vmem:[#allocation7 + $0x68] sm:$0xff]  ;;  %v177_v7 = vld [vmem:[#allocation7 + $0x60] sm:$0xff]  ;;  %v176_v8 = vld [vmem:[#allocation7 + $0x58] sm:$0xff]  ;;  %s361_s25 = sshll.u32 %s617_s24, 4  ;;  %s362_s25 = int_to_ptr.vmem [resolvable:$true] %s361_s25 }
  0x36   :  { %414 = vmatpush3.msra.mxu0 %v82_v1  ;;  %421 = vmatpush3.msra.mxu1 %v180_v4  ;;  %v175_v9 = vld [vmem:[#allocation7 + $0x50] sm:$0xff]  ;;  %v174_v10 = vld [vmem:[#allocation7 + $0x48] sm:$0xff]  ;;  %v173_v11 = vld [vmem:[#allocation7 + $0x40] sm:$0xff]  ;;  %p586_p7 = scmp.lt.s32.totalorder %s362_s25, %s362_s25 }
  0x37   :  { %415 = vmatprep.subr.mxu0 %v615_v0  ;;  %422 = vmatprep.subr.mxu1 %v615_v0  ;;  %v172_v12 = vld [vmem:[#allocation7 + $0x38] sm:$0xff]  ;;  %v171_v13 = vld [vmem:[#allocation7 + $0x30] sm:$0xff]  ;;  %v170_v14 = vld [vmem:[#allocation7 + $0x28] sm:$0xff] }
  0x38   :  { %416 = vmatpush3.msra.mxu0 %v81_v2  ;;  %423 = vmatpush3.msra.mxu1 %v179_v5  ;;  %v169_v15 = vld [vmem:[#allocation7 + $0x20] sm:$0xff]  ;;  %v168_v16 = vld [vmem:[#allocation7 + $0x18] sm:$0xff]  ;;  %v167_v17 = vld [vmem:[#allocation7 + $0x10] sm:$0xff] }
  0x39   :  { %418 = vmatmul.mubr.msk.f32.vlgmr.msra.gmra.mxu0 %vm90_vm1, %v80_v3  ;;  %424 = vmatprep.subr.mxu1 %v615_v0  ;;  %v166_v18 = vld [vmem:[#allocation7 + $0x8] sm:$0xff]  ;;  %v165_v19 = vld [vmem:[#allocation7] sm:$0xff]  ;;  %v274_v20 = vld [vmem:[#allocation8 + $0x78] sm:$0xff] }
  0x3a   :  { %455 = vmatprep.subr.mxu0 %v615_v0  ;;  %425 = vmatpush3.msra.mxu1 %v178_v6  ;;  %v273_v21 = vld [vmem:[#allocation8 + $0x70] sm:$0xff]  ;;  %v272_v22 = vld [vmem:[#allocation8 + $0x68] sm:$0xff]  ;;  %v271_v23 = vld [vmem:[#allocation8 + $0x60] sm:$0xff] }
  0x3b   :  { %487 = vmatprep.mubr.msk.f32.mxu0 %vm616_vm0, %v615_v0  ;;  %426 = vmatprep.subr.mxu1 %v615_v0  ;;  %v270_v24 = vld [vmem:[#allocation8 + $0x58] sm:$0xff]  ;;  %v269_v25 = vld [vmem:[#allocation8 + $0x50] sm:$0xff]  ;;  %v268_v26 = vld [vmem:[#allocation8 + $0x48] sm:$0xff] }
  0x3c   :  { %427 = vmatpush3.msra.mxu1 %v177_v7  ;;  %456 = vmatpush3.msra.mxu0 %v274_v20  ;;  %v267_v27 = vld [vmem:[#allocation8 + $0x40] sm:$0xff]  ;;  %v266_v28 = vld [vmem:[#allocation8 + $0x38] sm:$0xff]  ;;  %v265_v29 = vld [vmem:[#allocation8 + $0x30] sm:$0xff] }
  0x3d   :  { %428 = vmatprep.subr.mxu1 %v615_v0  ;;  %457 = vmatprep.subr.mxu0 %v615_v0  ;;  %v264_v30 = vld [vmem:[#allocation8 + $0x28] sm:$0xff]  ;;  %v263_v31 = vld [vmem:[#allocation8 + $0x20] sm:$0xff]  ;;  %v262_v32 = vld [vmem:[#allocation8 + $0x18] sm:$0xff] }
  0x3e   :  { %429 = vmatpush3.msra.mxu1 %v176_v8  ;;  %458 = vmatpush3.msra.mxu0 %v273_v21  ;;  %v372_v33 = vld [vmem:[%s733_s2] ss:$0 sm:$0xff]  ;;  %v261_v38 = vld [vmem:[#allocation8 + $0x10] sm:$0xff]  ;;  %v259_v40 = vld [vmem:[#allocation8] sm:$0xff] }
  0x3f   :  { %430 = vmatprep.subr.mxu1 %v615_v0  ;;  %459 = vmatprep.subr.mxu0 %v615_v0  ;;  %v260_v39 = vld [vmem:[#allocation8 + $0x8] sm:$0xff] }
  0x40   :  { %431 = vmatpush3.msra.mxu1 %v175_v9  ;;  %460 = vmatpush3.msra.mxu0 %v272_v22  ;;  %v374_v41 = vld [vmem:[%s735_s4] ss:$0 sm:$0xff]  ;;  %s581_s4 = scalar_lea.vmem %s362_s25, 128 }
  0x41   :  { %432 = vmatprep.subr.mxu1 %v615_v0  ;;  %461 = vmatprep.subr.mxu0 %v615_v0  ;;  %v375_v46 = vld [vmem:[%s737_s6] ss:$0 sm:$0xff]  ;;  %p582_p6 = scmp.ne.s32.totalorder %s362_s25, %s581_s4  ;;  %p587_p8 = scmp.lt.s32.totalorder %s581_s4, %s581_s4 }
  0x42   :  { %433 = vmatpush3.msra.mxu1 %v174_v10  ;;  %462 = vmatpush3.msra.mxu0 %v271_v23 }
  0x43   :  { %434 = vmatprep.subr.mxu1 %v615_v0  ;;  %463 = vmatprep.subr.mxu0 %v615_v0  ;;  %p588_p9 = por %p587_p8, %p586_p7 }
  0x44   :  { %435 = vmatpush3.msra.mxu1 %v173_v11  ;;  %464 = vmatpush3.msra.mxu0 %v270_v24 }
  0x45   :  { %436 = vmatprep.subr.mxu1 %v615_v0  ;;  %465 = vmatprep.subr.mxu0 %v615_v0  ;;  %p589_p10 = pnand %p588_p9, %p582_p6 }
  0x46   :  { %437 = vmatpush3.msra.mxu1 %v172_v12  ;;  %466 = vmatpush3.msra.mxu0 %v269_v25 }
  0x47   :  { %438 = vmatprep.subr.mxu1 %v615_v0  ;;  %467 = vmatprep.subr.mxu0 %v615_v0 }
  0x48   :  { %439 = vmatpush3.msra.mxu1 %v171_v13  ;;  %468 = vmatpush3.msra.mxu0 %v268_v26 }
  0x49   :  { %440 = vmatprep.subr.mxu1 %v615_v0  ;;  %469 = vmatprep.subr.mxu0 %v615_v0 }
  0x4a   :  { %441 = vmatpush3.msra.mxu1 %v170_v14  ;;  %470 = vmatpush3.msra.mxu0 %v267_v27 }
  0x4b   :  { %442 = vmatprep.subr.mxu1 %v615_v0  ;;  %471 = vmatprep.subr.mxu0 %v615_v0 }
  0x4c   :  { %443 = vmatpush3.msra.mxu1 %v169_v15  ;;  %472 = vmatpush3.msra.mxu0 %v266_v28 }
  0x4d   :  { %444 = vmatprep.subr.mxu1 %v615_v0  ;;  %473 = vmatprep.subr.mxu0 %v615_v0 }
  0x4e   :  { %445 = vmatpush3.msra.mxu1 %v168_v16  ;;  %474 = vmatpush3.msra.mxu0 %v265_v29 }
  0x4f   :  { %446 = vmatprep.subr.mxu1 %v615_v0  ;;  %475 = vmatprep.subr.mxu0 %v615_v0 }
  0x50   :  { %447 = vmatpush3.msra.mxu1 %v167_v17  ;;  %476 = vmatpush3.msra.mxu0 %v264_v30 }
  0x51   :  { %448 = vmatprep.subr.mxu1 %v615_v0  ;;  %477 = vmatprep.subr.mxu0 %v615_v0 }
  0x52   :  { %449 = vmatpush3.msra.mxu1 %v166_v18  ;;  %478 = vmatpush3.msra.mxu0 %v263_v31 }
  0x53   :  { %450 = vmatprep.subr.mxu1 %v615_v0  ;;  %479 = vmatprep.subr.mxu0 %v615_v0 }
  0x54   :  { %451 = vmatpush3.msra.mxu1 %v165_v19  ;;  %480 = vmatpush3.msra.mxu0 %v262_v32 }
  0x55   :  { %481 = vmatprep.subr.mxu0 %v615_v0 }
  0x56   :  { %482 = vmatpush3.msra.mxu0 %v261_v38 }
  0x57   :  { %483 = vmatprep.subr.mxu0 %v615_v0 }
  0x58   :  { %484 = vmatpush3.msra.mxu0 %v260_v39 }
  0x59   :  { %485 = vmatprep.subr.mxu0 %v615_v0 }
  0x5a   :  { %486 = vmatpush3.msra.mxu0 %v259_v40 }
  0xf9   :  { %v160_v34 = vpop.f32.mrf.mxu0 }
  0xfa   :  { %v161_v35 = vadd.f32 %v372_v33, %v160_v34 }
  0xfb   :  { %v419_v36 = vpop.f32.mrf.mxu0 }
  0xfc   :  { %v164_v37 = vmax.f32 %v161_v35, 0.0 }
  0xfe   :  { %453 = vmatmul.mubr.f32.vlgmr.msra.gmra.mxu1 %v164_v37 }
 0x1be   :  { %v254_v42 = vpop.f32.mrf.mxu1 }
 0x1bf   :  { %v255_v43 = vadd.f32 %v374_v41, %v254_v42 }
 0x1c0   :  { %v454_v44 = vpop.f32.mrf.mxu1 }
 0x1c1   :  { %v258_v45 = vmax.f32 %v255_v43, 0.0 }
 0x1c3   :  { %488 = vmatmul.mubr.f32.vlgmr.msra.gmra.mxu0 %v258_v45 }
 0x283   :  { %v348_v47 = vpop.f32.mrf.mxu0 }
 0x284   :  { %v349_v48 = vadd.f32 %v375_v46, %v348_v47 }
 0x285   :  { %v489_v49 = vpop.f32.mrf.mxu0 }
 0x286   :  { %499 = vtanh.f32 %v349_v48 }
 0x293   :  { %v500_v50 = vpop.eup %499 }
 0x294   :  { %354 = vst.msk [vmem:[#allocation10] sm:$0xff] %vm353_vm2, %v500_v50 }
 0x295   :  { %592 = shalt.err (!%p589_p10)
}
 0x296   :  { %364 = dma.vmem_to_hbm [thread:$0]  %s362_s25, 128, %s738_s7, [#allocation4]  }
 0x297   :  { %607 = dma.done.wait [#allocation4], 128  }
 0x298   :  { %608 = vsyncadd [#allocation4], 4294967168 }
 0x299   :  { %368 = vsyncpa [#allocation3], 1 }
 0x29a   :  { %369 = vsyncpa [#allocation6], 1 }
 0x29b   :  { %370 = vsyncpa [#allocation9], 1 }
 0x29c   :  { %371 = vsyncpa [#allocation4], 1 }

</bundles_post_ra>
